<compile_context>
chip_gen: v7x
topology: tpu7x:2x2x1
jax: 0.10.0
libtpu: 0.0.40
codegen_flags: <defaults>
</compile_context>

<pallas_src>
import functools

import jax
import jax.numpy as jnp
from jax import lax
from jax.experimental import pallas as pl
from jax.experimental.pallas import tpu as pltpu


def _fused_crblock_kernel(p1_ref, w1_ref, b1_ref, w2_ref, b2_ref, o_ref,
                          *, H1, W1, neg_slope):
    """One batch image: conv1 (stride-2 GEMM) + LReLU -> conv2 (9 taps) + LReLU.

    Transposed layout: flattened output spatial axis M = H1*W1 is the lane axis.

    p1_ref : (1, 9*Cin, M)  stride-2 im2col patches, rows ordered (kh, kw, cin)
    w1_ref : (Cout, 9*Cin)  conv1 weights, transposed to match p1 row order
    b1_ref : (Cout, 1)
    w2_ref : (9, Cout, Cmid) conv2 weights, one (Cout, Cmid) matrix per tap
    b2_ref : (Cout, 1)
    o_ref  : (1, Cout, M)   already NCHW once M is folded back to (H1, W1)
    """
    M = H1 * W1
    Wp = W1 + 1                      # flat zero-pad length on each side of y1

    # ---- conv1: one MXU GEMM with spatial on lanes; bias + LReLU on VPU ----
    y1 = jnp.dot(w1_ref[...], p1_ref[0], preferred_element_type=jnp.float32)
    y1 = y1 + b1_ref[...]                                    # (Cout, 1) bcast
    y1 = jnp.where(y1 > 0, y1, neg_slope * y1)               # (Cmid, M)
    Cmid = y1.shape[0]

    # ---- conv2: 9 accumulating MXU taps on lane-shifted copies of y1 -------
    # Pad the flattened activation with W1+1 zero lanes per side: vertical
    # (dh) shifts that fall off the image then read zeros; only the horizontal
    # row-wrap (dw != 0) needs a per-column mask.  No pad scratch, no (H,W,C)
    # reshapes, no concat of narrow columns.
    zpad = jnp.zeros((Cmid, Wp), jnp.float32)
    y1p = jnp.concatenate([zpad, y1, zpad], axis=1)          # (Cmid, M + 2*Wp)

    j = lax.broadcasted_iota(jnp.int32, (1, M), 1) % W1      # column index
    col_ok = {-1: j >= 1, 0: None, 1: j <= W1 - 2}

    w2 = w2_ref[...]                                         # (9, Cout, Cmid)
    acc = jnp.zeros((w2.shape[1], M), jnp.float32) + b2_ref[...]
    taps = [(dh, dw) for dh in (-1, 0, 1) for dw in (-1, 0, 1)]
    for t, (dh, dw) in enumerate(taps):
        if dh == 0 and dw == 0:
            tap = y1
        else:
            s = Wp + dh * W1 + dw                            # static lane offset
            tap = y1p[:, s:s + M]                            # lane-shifted copy
            if col_ok[dw] is not None:
                tap = jnp.where(col_ok[dw], tap, 0.0)
        acc = acc + jnp.dot(w2[t], tap, preferred_element_type=jnp.float32)

    y2 = jnp.where(acc > 0, acc, neg_slope * acc)            # LeakyReLU(0.2)
    o_ref[0] = y2.astype(o_ref.dtype)


def _im2col_stride2_taps(x_nchw):
    """(N, C, H, W) -> (N, 9*C, H1*W1) patches for a 3x3, pad=1, stride-2 conv.

    Transposed im2col: tap-major (kh, kw, c) rows, flattened output spatial on
    the last (lane) axis.  Pure layout plumbing; with allow_input_fusion it is
    fused into the pallas input DMA instead of round-tripping HBM.
    """
    N, C, H, W = x_nchw.shape
    H1 = (H + 2 - 3) // 2 + 1
    W1 = (W + 2 - 3) // 2 + 1
    xp = jnp.pad(x_nchw, ((0, 0), (0, 0), (1, 1), (1, 1)))
    taps = [xp[:, :, kh:kh + 2 * (H1 - 1) + 1:2, kw:kw + 2 * (W1 - 1) + 1:2]
            for kh in range(3) for kw in range(3)]           # 9 x (N, C, H1, W1)
    p = jnp.concatenate(taps, axis=1)                        # (N, 9*C, H1, W1)
    return p.reshape(N, 9 * C, H1 * W1), H1, W1


def inblock_forward(x_nchw, params):
    """Pallas implementation of inblock.forward.  x_nchw: (N, Cin, H, W) f32."""
    w1, b1, w2, b2 = params          # weights in HWIO = torch w.permute(2,3,1,0)
    N, Cin, H, W = x_nchw.shape
    Cout = w1.shape[-1]

    p1, H1, W1 = _im2col_stride2_taps(x_nchw)                # (N, 9*Cin, M)
    M = H1 * W1
    K1 = 9 * Cin

    w1t = w1.reshape(K1, Cout).T                             # (Cout, 9*Cin)
    w2t = jnp.transpose(w2, (0, 1, 3, 2)).reshape(9, Cout, Cout)  # tap-major
    b1c = b1.reshape(Cout, 1)
    b2c = b2.reshape(Cout, 1)

    kernel = functools.partial(_fused_crblock_kernel, H1=H1, W1=W1,
                               neg_slope=0.2)

    out_flat = pl.pallas_call(
        kernel,
        out_shape=jax.ShapeDtypeStruct((N, Cout, M), x_nchw.dtype),
        grid_spec=pltpu.PrefetchScalarGridSpec(
            num_scalar_prefetch=0,
            grid=(N,),
            in_specs=[
                pl.BlockSpec((1, K1, M), lambda n: (n, 0, 0)),       # patches
                pl.BlockSpec((Cout, K1), lambda n: (0, 0)),          # w1^T (resident)
                pl.BlockSpec((Cout, 1), lambda n: (0, 0)),           # b1
                pl.BlockSpec((9, Cout, Cout), lambda n: (0, 0, 0)),  # w2 taps (resident)
                pl.BlockSpec((Cout, 1), lambda n: (0, 0)),           # b2
            ],
            out_specs=pl.BlockSpec((1, Cout, M), lambda n: (n, 0, 0)),
        ),
        compiler_params=pltpu.CompilerParams(
            dimension_semantics=("parallel",),
            # Fuse the im2col producer into the pallas input DMA so the 2.25x
            # patch slab never materializes in HBM.
            allow_input_fusion=[True, False, False, False, False],
        ),
    )(p1, w1t, b1c, w2t, b2c)

    # (N, Cout, M) is already NCHW-flat: just fold M back into (H1, W1).
    return out_flat.reshape(N, Cout, H1, W1)


# ---------------------------- pure-JAX reference ----------------------------
def _conv_lrelu_ref(x, w, b, stride):
    y = lax.conv_general_dilated(
        x, w, window_strides=(stride, stride), padding=((1, 1), (1, 1)),
        dimension_numbers=('NCHW', 'HWIO', 'NCHW'))
    y = y + b.reshape(1, -1, 1, 1)
    return jnp.where(y > 0, y, 0.2 * y)


def inblock_ref(x_nchw, params):
    w1, b1, w2, b2 = params
    y = _conv_lrelu_ref(x_nchw, w1, b1, 2)
    return _conv_lrelu_ref(y, w2, b2, 1)


if __name__ == "__main__":
    in_ch, out_ch = 4, 8
    N, H, W = 2, 16, 16

    key = jax.random.PRNGKey(0)
    kx, k1, k2, k3, k4 = jax.random.split(key, 5)

    # Deterministic synthetic parameters (conv weights in HWIO layout).
    w1 = 0.1 * jax.random.normal(k1, (3, 3, in_ch, out_ch), jnp.float32)
    b1 = 0.1 * jax.random.normal(k2, (out_ch,), jnp.float32)
    w2 = 0.1 * jax.random.normal(k3, (3, 3, out_ch, out_ch), jnp.float32)
    b2 = 0.1 * jax.random.normal(k4, (out_ch,), jnp.float32)
    params = (w1, b1, w2, b2)

    x = jax.random.normal(kx, (N, in_ch, H, W), jnp.float32)  # NCHW like PyTorch

    fwd = jax.jit(inblock_forward)
    out = jax.block_until_ready(fwd(x, params))
    ref = inblock_ref(x, params)

    assert out.shape == (N, out_ch, H // 2, W // 2), out.shape
    err = float(jnp.max(jnp.abs(out - ref)))
    assert jnp.allclose(out, ref, rtol=2e-4, atol=2e-4), err

    print("KERNEL_OK")
</pallas_src>

<mosaic_0001>
module attributes {stable_mosaic.version = 11 : i64} {
  func.func @_fused_crblock_kernel(%arg0: i32, %arg1: memref<1x36x64xf32, #tpu.memory_space<vmem>>, %arg2: memref<8x36xf32, #tpu.memory_space<vmem>>, %arg3: memref<8x1xf32, #tpu.memory_space<vmem>>, %arg4: memref<9x8x8xf32, #tpu.memory_space<vmem>>, %arg5: memref<8x1xf32, #tpu.memory_space<vmem>>, %arg6: memref<1x8x64xf32, #tpu.memory_space<vmem>>) attributes {dimension_semantics = [#tpu.dimension_semantics<parallel>], iteration_bounds = array<i64: 2>, scalar_prefetch = 0 : i64, scratch_operands = 0 : i64, tpu.core_type = #tpu.core_type<tc>, window_params = [{transform_indices = @transform_0, window_bounds = array<i64: 1, 36, 64>}, {pipeline_mode = #tpu.pipeline_mode<synchronous>, transform_indices = @transform_1, window_bounds = array<i64: 8, 36>}, {pipeline_mode = #tpu.pipeline_mode<synchronous>, transform_indices = @transform_2, window_bounds = array<i64: 8, 1>}, {pipeline_mode = #tpu.pipeline_mode<synchronous>, transform_indices = @transform_3, window_bounds = array<i64: 9, 8, 8>}, {pipeline_mode = #tpu.pipeline_mode<synchronous>, transform_indices = @transform_4, window_bounds = array<i64: 8, 1>}, {transform_indices = @transform_5, window_bounds = array<i64: 1, 8, 64>}]} {
    %c0 = arith.constant 0 : index
    %c0_0 = arith.constant 0 : index
    %0 = vector.load %arg2[%c0, %c0_0] : memref<8x36xf32, #tpu.memory_space<vmem>>, vector<8x36xf32>
    %c0_1 = arith.constant 0 : index
    %c0_2 = arith.constant 0 : index
    %c0_3 = arith.constant 0 : index
    %1 = vector.load %arg1[%c0_1, %c0_2, %c0_3] : memref<1x36x64xf32, #tpu.memory_space<vmem>>, vector<1x36x64xf32>
    %2 = vector.shape_cast %1 : vector<1x36x64xf32> to vector<36x64xf32>
    %cst = arith.constant dense<0.000000e+00> : vector<8x64xf32>
    %3 = tpu.matmul %0, %2, %cst {dimension_numbers = #tpu.dot_dimension_numbers<[1], [0], [0], [1], [0, 0, 1, 1], [], []>} : vector<8x36xf32>, vector<36x64xf32>, vector<8x64xf32> -> vector<8x64xf32>
    %c0_4 = arith.constant 0 : index
    %c0_5 = arith.constant 0 : index
    %4 = vector.load %arg3[%c0_4, %c0_5] : memref<8x1xf32, #tpu.memory_space<vmem>>, vector<8x1xf32>
    %5 = vector.broadcast %4 : vector<8x1xf32> to vector<8x64xf32>
    %6 = arith.addf %3, %5 : vector<8x64xf32>
    %cst_6 = arith.constant 0.000000e+00 : f32
    %7 = vector.broadcast %cst_6 : f32 to vector<8x64xf32>
    %8 = arith.cmpf ogt, %6, %7 : vector<8x64xf32>
    %cst_7 = arith.constant 2.000000e-01 : f32
    %9 = vector.broadcast %cst_7 : f32 to vector<8x64xf32>
    %10 = arith.mulf %9, %6 : vector<8x64xf32>
    %11 = arith.select %8, %6, %10 : vector<8x64xi1>, vector<8x64xf32>
    %cst_8 = arith.constant 0.000000e+00 : f32
    %12 = vector.broadcast %cst_8 : f32 to vector<8x9xf32>
    %13 = tpu.concatenate %12, %11, %12 in 1 : vector<8x9xf32>, vector<8x64xf32>, vector<8x9xf32> -> vector<8x82xf32>
    %14 = tpu.iota {dimensions = array<i32: 1>} : vector<1x64xi32>
    %c8_i32 = arith.constant 8 : i32
    %c0_i32 = arith.constant 0 : i32
    %15 = arith.cmpi eq, %c8_i32, %c0_i32 : i32
    %c1_i32 = arith.constant 1 : i32
    %16 = arith.select %15, %c1_i32, %c8_i32 : i32
    %17 = vector.broadcast %16 : i32 to vector<1x64xi32>
    %18 = arith.remsi %14, %17 : vector<1x64xi32>
    %c0_i32_9 = arith.constant 0 : i32
    %19 = vector.broadcast %c0_i32_9 : i32 to vector<1x64xi32>
    %20 = arith.cmpi ne, %18, %19 : vector<1x64xi32>
    %c0_i32_10 = arith.constant 0 : i32
    %21 = vector.broadcast %c0_i32_10 : i32 to vector<1x64xi32>
    %22 = arith.cmpi slt, %18, %21 : vector<1x64xi32>
    %c0_i32_11 = arith.constant 0 : i32
    %23 = arith.cmpi slt, %16, %c0_i32_11 : i32
    %24 = vector.broadcast %23 : i1 to vector<1x64xi1>
    %25 = vector.broadcast %24 : vector<1x64xi1> to vector<1x64xi1>
    %26 = arith.xori %22, %25 : vector<1x64xi1>
    %27 = arith.andi %26, %20 : vector<1x64xi1>
    %28 = vector.broadcast %16 : i32 to vector<1x64xi32>
    %29 = arith.addi %18, %28 : vector<1x64xi32>
    %30 = arith.select %27, %29, %18 : vector<1x64xi1>, vector<1x64xi32>
    %c1_i32_12 = arith.constant 1 : i32
    %31 = vector.broadcast %c1_i32_12 : i32 to vector<1x64xi32>
    %32 = arith.cmpi sge, %30, %31 : vector<1x64xi32>
    %c6_i32 = arith.constant 6 : i32
    %33 = vector.broadcast %c6_i32 : i32 to vector<1x64xi32>
    %34 = arith.cmpi sle, %30, %33 : vector<1x64xi32>
    %c0_13 = arith.constant 0 : index
    %c0_14 = arith.constant 0 : index
    %c0_15 = arith.constant 0 : index
    %35 = vector.load %arg4[%c0_13, %c0_14, %c0_15] : memref<9x8x8xf32, #tpu.memory_space<vmem>>, vector<9x8x8xf32>
    %cst_16 = arith.constant 0.000000e+00 : f32
    %36 = vector.broadcast %cst_16 : f32 to vector<8x64xf32>
    %c0_17 = arith.constant 0 : index
    %c0_18 = arith.constant 0 : index
    %37 = vector.load %arg5[%c0_17, %c0_18] : memref<8x1xf32, #tpu.memory_space<vmem>>, vector<8x1xf32>
    %38 = vector.broadcast %37 : vector<8x1xf32> to vector<8x64xf32>
    %39 = arith.addf %36, %38 : vector<8x64xf32>
    %40 = vector.extract_strided_slice %13 {offsets = [0, 0], sizes = [8, 64], strides = [1, 1]} : vector<8x82xf32> to vector<8x64xf32>
    %cst_19 = arith.constant 0.000000e+00 : f32
    %41 = vector.shape_cast %32 : vector<1x64xi1> to vector<1x64xi1>
    %42 = vector.broadcast %41 : vector<1x64xi1> to vector<8x64xi1>
    %43 = vector.broadcast %cst_19 : f32 to vector<8x64xf32>
    %44 = arith.select %42, %40, %43 : vector<8x64xi1>, vector<8x64xf32>
    %45 = vector.extract_strided_slice %35 {offsets = [0, 0, 0], sizes = [1, 8, 8], strides = [1, 1, 1]} : vector<9x8x8xf32> to vector<1x8x8xf32>
    %46 = vector.shape_cast %45 : vector<1x8x8xf32> to vector<8x8xf32>
    %cst_20 = arith.constant dense<0.000000e+00> : vector<8x64xf32>
    %47 = tpu.matmul %46, %44, %cst_20 {dimension_numbers = #tpu.dot_dimension_numbers<[1], [0], [0], [1], [0, 0, 1, 1], [], []>} : vector<8x8xf32>, vector<8x64xf32>, vector<8x64xf32> -> vector<8x64xf32>
    %48 = arith.addf %39, %47 : vector<8x64xf32>
    %49 = vector.extract_strided_slice %13 {offsets = [0, 1], sizes = [8, 64], strides = [1, 1]} : vector<8x82xf32> to vector<8x64xf32>
    %50 = vector.extract_strided_slice %35 {offsets = [1, 0, 0], sizes = [1, 8, 8], strides = [1, 1, 1]} : vector<9x8x8xf32> to vector<1x8x8xf32>
    %51 = vector.shape_cast %50 : vector<1x8x8xf32> to vector<8x8xf32>
    %cst_21 = arith.constant dense<0.000000e+00> : vector<8x64xf32>
    %52 = tpu.matmul %51, %49, %cst_21 {dimension_numbers = #tpu.dot_dimension_numbers<[1], [0], [0], [1], [0, 0, 1, 1], [], []>} : vector<8x8xf32>, vector<8x64xf32>, vector<8x64xf32> -> vector<8x64xf32>
    %53 = arith.addf %48, %52 : vector<8x64xf32>
    %54 = vector.extract_strided_slice %13 {offsets = [0, 2], sizes = [8, 64], strides = [1, 1]} : vector<8x82xf32> to vector<8x64xf32>
    %cst_22 = arith.constant 0.000000e+00 : f32
    %55 = vector.shape_cast %34 : vector<1x64xi1> to vector<1x64xi1>
    %56 = vector.broadcast %55 : vector<1x64xi1> to vector<8x64xi1>
    %57 = vector.broadcast %cst_22 : f32 to vector<8x64xf32>
    %58 = arith.select %56, %54, %57 : vector<8x64xi1>, vector<8x64xf32>
    %59 = vector.extract_strided_slice %35 {offsets = [2, 0, 0], sizes = [1, 8, 8], strides = [1, 1, 1]} : vector<9x8x8xf32> to vector<1x8x8xf32>
    %60 = vector.shape_cast %59 : vector<1x8x8xf32> to vector<8x8xf32>
    %cst_23 = arith.constant dense<0.000000e+00> : vector<8x64xf32>
    %61 = tpu.matmul %60, %58, %cst_23 {dimension_numbers = #tpu.dot_dimension_numbers<[1], [0], [0], [1], [0, 0, 1, 1], [], []>} : vector<8x8xf32>, vector<8x64xf32>, vector<8x64xf32> -> vector<8x64xf32>
    %62 = arith.addf %53, %61 : vector<8x64xf32>
    %63 = vector.extract_strided_slice %13 {offsets = [0, 8], sizes = [8, 64], strides = [1, 1]} : vector<8x82xf32> to vector<8x64xf32>
    %cst_24 = arith.constant 0.000000e+00 : f32
    %64 = vector.shape_cast %32 : vector<1x64xi1> to vector<1x64xi1>
    %65 = vector.broadcast %64 : vector<1x64xi1> to vector<8x64xi1>
    %66 = vector.broadcast %cst_24 : f32 to vector<8x64xf32>
    %67 = arith.select %65, %63, %66 : vector<8x64xi1>, vector<8x64xf32>
    %68 = vector.extract_strided_slice %35 {offsets = [3, 0, 0], sizes = [1, 8, 8], strides = [1, 1, 1]} : vector<9x8x8xf32> to vector<1x8x8xf32>
    %69 = vector.shape_cast %68 : vector<1x8x8xf32> to vector<8x8xf32>
    %cst_25 = arith.constant dense<0.000000e+00> : vector<8x64xf32>
    %70 = tpu.matmul %69, %67, %cst_25 {dimension_numbers = #tpu.dot_dimension_numbers<[1], [0], [0], [1], [0, 0, 1, 1], [], []>} : vector<8x8xf32>, vector<8x64xf32>, vector<8x64xf32> -> vector<8x64xf32>
    %71 = arith.addf %62, %70 : vector<8x64xf32>
    %72 = vector.extract_strided_slice %35 {offsets = [4, 0, 0], sizes = [1, 8, 8], strides = [1, 1, 1]} : vector<9x8x8xf32> to vector<1x8x8xf32>
    %73 = vector.shape_cast %72 : vector<1x8x8xf32> to vector<8x8xf32>
    %cst_26 = arith.constant dense<0.000000e+00> : vector<8x64xf32>
    %74 = tpu.matmul %73, %11, %cst_26 {dimension_numbers = #tpu.dot_dimension_numbers<[1], [0], [0], [1], [0, 0, 1, 1], [], []>} : vector<8x8xf32>, vector<8x64xf32>, vector<8x64xf32> -> vector<8x64xf32>
    %75 = arith.addf %71, %74 : vector<8x64xf32>
    %76 = vector.extract_strided_slice %13 {offsets = [0, 10], sizes = [8, 64], strides = [1, 1]} : vector<8x82xf32> to vector<8x64xf32>
    %cst_27 = arith.constant 0.000000e+00 : f32
    %77 = vector.shape_cast %34 : vector<1x64xi1> to vector<1x64xi1>
    %78 = vector.broadcast %77 : vector<1x64xi1> to vector<8x64xi1>
    %79 = vector.broadcast %cst_27 : f32 to vector<8x64xf32>
    %80 = arith.select %78, %76, %79 : vector<8x64xi1>, vector<8x64xf32>
    %81 = vector.extract_strided_slice %35 {offsets = [5, 0, 0], sizes = [1, 8, 8], strides = [1, 1, 1]} : vector<9x8x8xf32> to vector<1x8x8xf32>
    %82 = vector.shape_cast %81 : vector<1x8x8xf32> to vector<8x8xf32>
    %cst_28 = arith.constant dense<0.000000e+00> : vector<8x64xf32>
    %83 = tpu.matmul %82, %80, %cst_28 {dimension_numbers = #tpu.dot_dimension_numbers<[1], [0], [0], [1], [0, 0, 1, 1], [], []>} : vector<8x8xf32>, vector<8x64xf32>, vector<8x64xf32> -> vector<8x64xf32>
    %84 = arith.addf %75, %83 : vector<8x64xf32>
    %85 = vector.extract_strided_slice %13 {offsets = [0, 16], sizes = [8, 64], strides = [1, 1]} : vector<8x82xf32> to vector<8x64xf32>
    %cst_29 = arith.constant 0.000000e+00 : f32
    %86 = vector.shape_cast %32 : vector<1x64xi1> to vector<1x64xi1>
    %87 = vector.broadcast %86 : vector<1x64xi1> to vector<8x64xi1>
    %88 = vector.broadcast %cst_29 : f32 to vector<8x64xf32>
    %89 = arith.select %87, %85, %88 : vector<8x64xi1>, vector<8x64xf32>
    %90 = vector.extract_strided_slice %35 {offsets = [6, 0, 0], sizes = [1, 8, 8], strides = [1, 1, 1]} : vector<9x8x8xf32> to vector<1x8x8xf32>
    %91 = vector.shape_cast %90 : vector<1x8x8xf32> to vector<8x8xf32>
    %cst_30 = arith.constant dense<0.000000e+00> : vector<8x64xf32>
    %92 = tpu.matmul %91, %89, %cst_30 {dimension_numbers = #tpu.dot_dimension_numbers<[1], [0], [0], [1], [0, 0, 1, 1], [], []>} : vector<8x8xf32>, vector<8x64xf32>, vector<8x64xf32> -> vector<8x64xf32>
    %93 = arith.addf %84, %92 : vector<8x64xf32>
    %94 = vector.extract_strided_slice %13 {offsets = [0, 17], sizes = [8, 64], strides = [1, 1]} : vector<8x82xf32> to vector<8x64xf32>
    %95 = vector.extract_strided_slice %35 {offsets = [7, 0, 0], sizes = [1, 8, 8], strides = [1, 1, 1]} : vector<9x8x8xf32> to vector<1x8x8xf32>
    %96 = vector.shape_cast %95 : vector<1x8x8xf32> to vector<8x8xf32>
    %cst_31 = arith.constant dense<0.000000e+00> : vector<8x64xf32>
    %97 = tpu.matmul %96, %94, %cst_31 {dimension_numbers = #tpu.dot_dimension_numbers<[1], [0], [0], [1], [0, 0, 1, 1], [], []>} : vector<8x8xf32>, vector<8x64xf32>, vector<8x64xf32> -> vector<8x64xf32>
    %98 = arith.addf %93, %97 : vector<8x64xf32>
    %99 = vector.extract_strided_slice %13 {offsets = [0, 18], sizes = [8, 64], strides = [1, 1]} : vector<8x82xf32> to vector<8x64xf32>
    %cst_32 = arith.constant 0.000000e+00 : f32
    %100 = vector.shape_cast %34 : vector<1x64xi1> to vector<1x64xi1>
    %101 = vector.broadcast %100 : vector<1x64xi1> to vector<8x64xi1>
    %102 = vector.broadcast %cst_32 : f32 to vector<8x64xf32>
    %103 = arith.select %101, %99, %102 : vector<8x64xi1>, vector<8x64xf32>
    %104 = vector.extract_strided_slice %35 {offsets = [8, 0, 0], sizes = [1, 8, 8], strides = [1, 1, 1]} : vector<9x8x8xf32> to vector<1x8x8xf32>
    %105 = vector.shape_cast %104 : vector<1x8x8xf32> to vector<8x8xf32>
    %cst_33 = arith.constant dense<0.000000e+00> : vector<8x64xf32>
    %106 = tpu.matmul %105, %103, %cst_33 {dimension_numbers = #tpu.dot_dimension_numbers<[1], [0], [0], [1], [0, 0, 1, 1], [], []>} : vector<8x8xf32>, vector<8x64xf32>, vector<8x64xf32> -> vector<8x64xf32>
    %107 = arith.addf %98, %106 : vector<8x64xf32>
    %cst_34 = arith.constant 0.000000e+00 : f32
    %108 = vector.broadcast %cst_34 : f32 to vector<8x64xf32>
    %109 = arith.cmpf ogt, %107, %108 : vector<8x64xf32>
    %cst_35 = arith.constant 2.000000e-01 : f32
    %110 = vector.broadcast %cst_35 : f32 to vector<8x64xf32>
    %111 = arith.mulf %110, %107 : vector<8x64xf32>
    %112 = arith.select %109, %107, %111 : vector<8x64xi1>, vector<8x64xf32>
    %c0_36 = arith.constant 0 : index
    %c0_37 = arith.constant 0 : index
    %c0_38 = arith.constant 0 : index
    %113 = vector.load %arg6[%c0_36, %c0_37, %c0_38] : memref<1x8x64xf32, #tpu.memory_space<vmem>>, vector<1x8x64xf32>
    %114 = vector.shape_cast %113 : vector<1x8x64xf32> to vector<8x64xf32>
    %115 = vector.shape_cast %112 : vector<8x64xf32> to vector<1x8x64xf32>
    tpu.vector_store %arg6[%c0_36, %c0_37, %c0_38], %115 {strides = array<i32>} : memref<1x8x64xf32, #tpu.memory_space<vmem>>, vector<1x8x64xf32>,
    return
  }
  func.func @transform_0(%arg0: i32) -> (i32, i32, i32) {
    %c0_i32 = arith.constant 0 : i32
    %c0_i32_0 = arith.constant 0 : i32
    %c0_i32_1 = arith.constant 0 : i32
    return %arg0, %c0_i32, %c0_i32_0 : i32, i32, i32
  }
  func.func @transform_1(%arg0: i32) -> (i32, i32) {
    %c0_i32 = arith.constant 0 : i32
    %c0_i32_0 = arith.constant 0 : i32
    %c0_i32_1 = arith.constant 0 : i32
    return %c0_i32, %c0_i32_0 : i32, i32
  }
  func.func @transform_2(%arg0: i32) -> (i32, i32) {
    %c0_i32 = arith.constant 0 : i32
    %c0_i32_0 = arith.constant 0 : i32
    %c0_i32_1 = arith.constant 0 : i32
    return %c0_i32, %c0_i32_0 : i32, i32
  }
  func.func @transform_3(%arg0: i32) -> (i32, i32, i32) {
    %c0_i32 = arith.constant 0 : i32
    %c0_i32_0 = arith.constant 0 : i32
    %c0_i32_1 = arith.constant 0 : i32
    %c0_i32_2 = arith.constant 0 : i32
    return %c0_i32, %c0_i32_0, %c0_i32_1 : i32, i32, i32
  }
  func.func @transform_4(%arg0: i32) -> (i32, i32) {
    %c0_i32 = arith.constant 0 : i32
    %c0_i32_0 = arith.constant 0 : i32
    %c0_i32_1 = arith.constant 0 : i32
    return %c0_i32, %c0_i32_0 : i32, i32
  }
  func.func @transform_5(%arg0: i32) -> (i32, i32, i32) {
    %c0_i32 = arith.constant 0 : i32
    %c0_i32_0 = arith.constant 0 : i32
    %c0_i32_1 = arith.constant 0 : i32
    return %arg0, %c0_i32, %c0_i32_0 : i32, i32, i32
  }
}

</mosaic_0001>

<bundles_post_ra>
// kernel: inblock_forward.1
= control target key start
LH: loop header
LB: loop body
LE: loop exit
PB: predicated region body
PF: predicated region fallthrough
CT: control target
= control target key end

     0   :  { %s1316_s18 = smov 0   ;;  %s1432_s0 = inlined_call_operand.vmem [shape: f32[2,36,64], index: 0, kind: input, shape index: {}]   ;;  %s1433_s1 = inlined_call_operand.vmem [shape: f32[8,36], index: 1, kind: input, shape index: {}]   ;;  %s1434_s2 = inlined_call_operand.vmem [shape: f32[8,1], index: 2, kind: input, shape index: {}]   ;;  %s1435_s3 = inlined_call_operand.vmem [shape: f32[9,8,8], index: 3, kind: input, shape index: {}]   ;;  %s1436_s4 = inlined_call_operand.vmem [shape: f32[8,1], index: 4, kind: input, shape index: {}]   ;;  %s1437_s5 = inlined_call_operand.vmem [shape: f32[2,8,64], index: 5, kind: output, shape index: {}]  }
   0x1 LB: > { %s1113_s19 = sadd.s32 4294967295, %s1272_s18   ;;  %p1117_p0 = scmp.ge.s32.totalorder %s1272_s18, 1  ;;  %s1272_s18 = sphi %s1316_s18, %s15_s18  }
   0x2   : > { %p187_p1 = scmp.lt.s32.totalorder %s1272_s18, 3 }
   0x4   : > { %p188_p2 = pnand %p1117_p0, %p187_p1 }
   0x5   : > { %p214_p3 = scmp.lt.s32.totalorder (!%p188_p2), %s1113_s19, 1  ;;  %v1274_v0 = vmov (!%p188_p2), 0.0|0.0   ;;  %vm1275_vm0 = vmmov (!%p188_p2), 0   ;;  %v1276_v1 = vmov (!%p188_p2), 0.0   ;;  %v229_v2 = vld [vmem:[%s1434_s2] sm:$0xff] (!%p188_p2)  ;;  %v1277_v3 = vmov (!%p188_p2), 0  }
   0x6   : > { %191 = sbr.rel (%p188_p2) target bundleno = 737 (0x2e1), region = 40  ;;  %1221 = vmatprep.subr.bf16.mxu0 (!%p188_p2), %v1274_v0  ;;  %1173 = vmatprep.mubr.msk.f32.mxu0 (!%p188_p2), %vm1275_vm0, %v1276_v1  ;;  %vm239_vm1 = vcmask (!%p188_p2), 1043456   ;;  %v223_v11 = vld [vmem:[%s1433_s1] sm:$0xff] (!%p188_p2)  ;;  %vm235_vm2 = vcmask (!%p188_p2), 293888   ;;  %s1278_s28 = smov (!%p188_p2), 9   ;;  %v324_v18 = vlaneseq (!%p188_p2)  ;;  %vm320_vm4 = vcmask (!%p188_p2), 72704  }
   0x7   : > { %1264 = vset.pattern.permute.xlu0 (!%p188_p2), %v1277_v3  ;;  %1191 = vmatprep.subr.mxu1 (!%p188_p2), %v1276_v1  ;;  %vm322_vm5 = vcmask (!%p188_p2), 596992   ;;  %v340_v25 = vld [vmem:[%s1435_s3] sm:$0xff] (!%p188_p2)  ;;  %s1279_s6 = smov (!%p188_p2), 112   ;;  %s1280_s7 = smov (!%p188_p2), 120   ;;  %vm359_vm7 = vcmask (!%p188_p2), 64512   ;;  %v343_v27 = vld [vmem:[%s1435_s3 + $0x18] sm:$0xff] (!%p188_p2) }
   0x8   : > { %232 = vperm.xlu0 (!%p188_p2), %1264, %v229_v2   ;;  %1193 = vmatprep.mubr.msk.f32.mxu1 (!%p188_p2), %vm1275_vm0, %v1276_v1  ;;  %v325_v19 = vand.u32 (!%p188_p2), 127, %v324_v18  ;;  %s1281_s8 = smov (!%p188_p2), 111   ;;  %s1282_s9 = smov (!%p188_p2), 118   ;;  %v349_v26 = vld [vmem:[%s1436_s4] sm:$0xff] (!%p188_p2)  ;;  %v341_v33 = vld [vmem:[%s1435_s3 + $0x8] sm:$0xff] (!%p188_p2)  ;;  %v342_v36 = vld [vmem:[%s1435_s3 + $0x10] sm:$0xff] (!%p188_p2) }
   0x9   : > { %1265 = vset.pattern.permute.xlu1 (!%p188_p2), %v1277_v3  ;;  %s1283_s10 = smov (!%p188_p2), 110   ;;  %s1284_s11 = smov (!%p188_p2), 127   ;;  %v344_v30 = vld [vmem:[%s1435_s3 + $0x20] sm:$0xff] (!%p188_p2)  ;;  %v345_v35 = vld [vmem:[%s1435_s3 + $0x28] sm:$0xff] (!%p188_p2)  ;;  %v346_v38 = vld [vmem:[%s1435_s3 + $0x30] sm:$0xff] (!%p188_p2)  ;;  %vm1058_vm10 = vcmask (!%p188_p2), 523264  }
   0xa   : > { %v330_v20 = vand.u32 (!%p188_p2), 7, %v325_v19  ;;  %s1285_s12 = smov (!%p188_p2), 126   ;;  %v347_v40 = vld [vmem:[%s1435_s3 + $0x38] sm:$0xff] (!%p188_p2)  ;;  %v348_v42 = vld [vmem:[%s1435_s3 + $0x40] sm:$0xff] (!%p188_p2) }
   0xc   : > { %vm1345_vm6 = vcmp.ge.s32.totalorder (!%p188_p2), %v330_v20, 1  ;;  %vm1374_vm8 = vcmp.le.s32.totalorder (!%p188_p2), %v330_v20, 6 }
   0xd   : > { %s1443_s19 = smov (!%p214_p3, %s1113_s19), 1 }
   0xe   : > { %s1243_s22 = smul.u32 40, %s1443_s19 }
  0x10   : > { %s218_s25 = scalar_lea.vmem %s1432_s0, %s1243_s22 }
  0x11   : > { %v224_v4 = vld [vmem:[%s218_s25] sm:$0xff]  ;;  %v225_v5 = vld [vmem:[%s218_s25 + $0x8] sm:$0xff]  ;;  %v226_v6 = vld [vmem:[%s218_s25 + $0x10] sm:$0xff] }
  0x12   : > { %v1222_v7 = vpack.c.bf16 %v225_v5, %v224_v4  ;;  %v227_v8 = vld [vmem:[%s218_s25 + $0x18] sm:$0xff]  ;;  %v228_v10 = vld [vmem:[%s218_s25 + $0x20] sm:$0xf] }
  0x13   : > { %v1225_v9 = vpack.c.bf16 %v227_v8, %v226_v6 }
  0x14   : > { %1223 = vmatpush3.bf16.msra.mxu0 %v1222_v7 }
  0x15   : > { %1224 = vmatprep.subr.bf16.mxu0 %v1274_v0 }
  0x18   : > { %1226 = vmatpush3.bf16.msra.mxu0 %v1225_v9 }
  0x19   : > { %1171 = vmatprep.subr.mxu0 %v1276_v1 }
  0x1c   : > { %1172 = vmatpush3.msk.msra.mxu0 %vm239_vm1, %v228_v10 }
  0x1d   : > { %1174 = vmatmul.mubr.msk.f32.vlgmr.msra.gmra.mrb[0].mxu0 %vm235_vm2, %v223_v11  ;;  %1176 = vmatprep.subr.mxu0 %v1276_v1 }
  0x1e   : > { %1178 = vmatprep.mubr.msk.f32.mxu0 %vm1275_vm0, %v1276_v1 }
  0x87   : > { %v233_v12 = vpop.permute.xlu0 %232 }
  0xf0   : > { %v309_v13 = vpop.f32.mrb[0].mxu0 }
  0xf1   : > { %v310_v14 = vadd.f32 %v309_v13, %v233_v12  ;;  %v1175_v15 = vpop.f32.mrb[1].mxu0 }
  0xf3   : > { %v314_v16 = vmul.f32 0.2, %v310_v14  ;;  %vm313_vm3 = vcmp.gt.f32.partialorder %v310_v14, 0.0 }
  0xf5   : > { %v315_v17 = vsel %vm313_vm3, %v310_v14, %v314_v16 }
  0xf6   : > { %317 = vrot.lane.b32.xlu0 %v315_v17, %s1278_s28 }
 0x168   : > { %v318_v21 = vpop.permute.xlu0 %317 }
 0x169   : > { %v321_v22 = vsel %vm320_vm4, 0.0, %v318_v21 }
 0x16a   : > { %v323_v24 = vsel %vm322_vm5, %v321_v22, 0.0 }
 0x16b   : > { %822 = vrot.lane.b32.xlu0 %v323_v24, %s1279_s6  ;;  %592 = vrot.lane.b32.xlu1 %v323_v24, %s1280_s7 }
 0x16c   : > { %1177 = vmatpush3.msk.msra.mxu0 %vm1345_vm6, %v323_v24 }
 0x16d   : > { %1179 = vmatmul.mubr.msk.f32.vlgmr.msra.gmra.mrb[2].mxu0 %vm359_vm7, %v340_v25  ;;  %1181 = vmatprep.subr.mxu0 %v1276_v1 }
 0x16e   : > { %1183 = vmatprep.mubr.msk.f32.mxu0 %vm1275_vm0, %v1276_v1 }
 0x16f   : > { %900 = vrot.lane.b32.xlu0 %v323_v24, %s1281_s8  ;;  %744 = vrot.lane.b32.xlu1 %v323_v24, %s1282_s9  ;;  %s1119_s8 = sshll.u32 %s1443_s19, 3 }
 0x173   : > { %977 = vrot.lane.b32.xlu0 %v323_v24, %s1283_s10  ;;  %435 = vrot.lane.b32.xlu1 %v323_v24, %s1284_s11  ;;  %s222_s11 = scalar_lea.vmem %s1437_s5, %s1119_s8 }
 0x177   : > { %514 = vrot.lane.b32.xlu1 %v323_v24, %s1285_s12 }
 0x17b   : > { %352 = vperm.xlu1 %1265, %v349_v26  }
 0x1dd   : > { %v593_v28 = vpop.permute.xlu1 %592  ;;  %v823_v37 = vpop.permute.xlu0 %822 }
 0x1de   : > { %1192 = vmatpush3.msk.msra.mxu1 %vm1345_vm6, %v593_v28 }
 0x1df   : > { %1194 = vmatmul.mubr.msk.f32.vlgmr.msra.gmra.mrb[0].mxu1 %vm359_vm7, %v343_v27  ;;  %1196 = vmatprep.subr.mxu1 %v1276_v1 }
 0x1e0   : > { %1197 = vmatpush3.msra.mxu1 %v315_v17  ;;  %1198 = vmatprep.mubr.msk.f32.mxu1 %vm1275_vm0, %v1276_v1 }
 0x1e1   : > { %v745_v29 = vpop.permute.xlu1 %744  ;;  %1201 = vmatprep.subr.mxu1 %v1276_v1  ;;  %v901_v39 = vpop.permute.xlu0 %900 }
 0x1e5   : > { %v436_v31 = vpop.permute.xlu1 %435  ;;  %v978_v41 = vpop.permute.xlu0 %977 }
 0x1e6   : > { %1182 = vmatpush3.msra.mxu0 %v436_v31 }
 0x1e7   : > { %1199 = vmatmul.mubr.msk.f32.vlgmr.msra.gmra.mrb[0].mxu1 %vm359_vm7, %v344_v30  ;;  %1186 = vmatprep.subr.mxu0 %v1276_v1 }
 0x1e8   : > { %1202 = vmatpush3.msk.msra.mxu1 %vm1374_vm8, %v745_v29  ;;  %1184 = vmatmul.mubr.msk.f32.vlgmr.msra.gmra.mrb[2].mxu0 %vm359_vm7, %v341_v33 }
 0x1e9   : > { %v515_v34 = vpop.permute.xlu1 %514  ;;  %1203 = vmatprep.mubr.msk.f32.mxu1 %vm1275_vm0, %v1276_v1  ;;  %1206 = vmatprep.subr.mxu1 %v1276_v1 }
 0x1ea   : > { %1187 = vmatpush3.msk.msra.mxu0 %vm1374_vm8, %v515_v34  ;;  %1188 = vmatprep.mubr.msk.f32.mxu0 %vm1275_vm0, %v1276_v1 }
 0x1ef   : > { %1204 = vmatmul.mubr.msk.f32.vlgmr.msra.gmra.mrb[0].mxu1 %vm359_vm7, %v345_v35 }
 0x1f0   : > { %1207 = vmatpush3.msk.msra.mxu1 %vm1345_vm6, %v823_v37  ;;  %1189 = vmatmul.mubr.msk.f32.vlgmr.msra.gmra.mrb[2].mxu0 %vm359_vm7, %v342_v36 }
 0x1f1   : > { %1208 = vmatprep.mubr.msk.f32.mxu1 %vm1275_vm0, %v1276_v1  ;;  %1211 = vmatprep.subr.mxu1 %v1276_v1 }
 0x1f7   : > { %1209 = vmatmul.mubr.msk.f32.vlgmr.msra.gmra.mrb[0].mxu1 %vm359_vm7, %v346_v38 }
 0x1f8   : > { %1212 = vmatpush3.msra.mxu1 %v901_v39  ;;  %1213 = vmatprep.mubr.msk.f32.mxu1 %vm1275_vm0, %v1276_v1 }
 0x1f9   : > { %1216 = vmatprep.subr.mxu1 %v1276_v1 }
 0x1fa   : > { %v353_v45 = vpop.permute.xlu1 %352 }
 0x1ff   : > { %1214 = vmatmul.mubr.msk.f32.vlgmr.msra.gmra.mrb[0].mxu1 %vm359_vm7, %v347_v40 }
 0x200   : > { %1217 = vmatpush3.msk.msra.mxu1 %vm1374_vm8, %v978_v41  ;;  %1218 = vmatprep.mubr.msk.f32.mxu1 %vm1275_vm0, %v1276_v1 }
 0x207   : > { %1219 = vmatmul.mubr.msk.f32.vlgmr.msra.gmra.mrb[0].mxu1 %vm359_vm7, %v348_v42 }
 0x2c3   : > { %v587_v43 = vpop.f32.mrb[2].mxu0 }
 0x2c4   : > { %v1190_v44 = vpop.f32.mrb[3].mxu0  ;;  %v1227_v46 = vadd.f32 %v587_v43, %v353_v45 }
 0x2da   : > { %v1050_v47 = vpop.f32.mrb[0].mxu1 }
 0x2db   : > { %v1228_v48 = vadd.f32 %v1227_v46, %v1050_v47  ;;  %v1220_v49 = vpop.f32.mrb[1].mxu1 }
 0x2dd   : > { %vm1055_vm9 = vcmp.gt.f32.partialorder %v1228_v48, 0.0  ;;  %v1056_v50 = vmul.f32 0.2, %v1228_v48 }
 0x2df   : > { %v1057_v51 = vsel %vm1055_vm9, %v1228_v48, %v1056_v50 }
 0x2e0   : > { %1059 = vst.msk [vmem:[%s222_s11] sm:$0xff] %vm1058_vm10, %v1057_v51 }
 0x2e1 PF: > { %s15_s18 = sadd.s32 1, %s1272_s18  }
 0x2e2   : > { %p12_p4 = scmp.ge.s32.totalorder %s15_s18, 4  }
 0x2e4   :  { %14 = sbr.rel (!%p12_p4) target bundleno = 1 (0x1), region = 70 }

</bundles_post_ra>
